<compile_context>
chip_gen: v5e
topology: v5e:2x2
jax: 0.10.0
libtpu: 0.0.40
codegen_flags: <defaults>
</compile_context>

<pallas_src>
import math
import functools

import jax
import jax.numpy as jnp
from jax.experimental import pallas as pl
from jax.experimental.pallas import tpu as pltpu


def _sdpa_head_kernel(x_ref, kT_ref, o_ref, *, scale):
    """Whole-head SDPA. x_ref serves as both q and v (module uses q = v = x1).

    x_ref : (B, S, D) f32  -- queries/values for every batch of this head
    kT_ref: (D, S)    f32  -- this head's key, pre-transposed in the wrapper
    o_ref : (B, S, D)      -- output
    """
    B, S, D = x_ref.shape
    x = x_ref[...]                                   # one read, reused as q and v

    # ---- scores: fattened (B*S, D) @ (D, S) so MXU M-dim is B*S (=256) ----
    q = x.reshape(B * S, D).astype(jnp.bfloat16)     # leading-dim collapse: free
    kT = kT_ref[...].astype(jnp.bfloat16)
    s = jnp.dot(q, kT, preferred_element_type=jnp.float32) * scale   # (B*S, S) f32

    # ---- softmax (single kv tile -> no online carry); f32 elementwise ----
    m = jnp.max(s, axis=-1, keepdims=True)
    p = jnp.exp(s - m)
    l = jnp.sum(p, axis=-1, keepdims=True)           # (B*S, 1) f32

    # ---- PV: v differs per batch -> batched matmul over B ----
    p3 = p.reshape(B, S, S).astype(jnp.bfloat16)
    v = x.astype(jnp.bfloat16)
    pv = jnp.einsum("bqk,bkd->bqd", p3, v,
                    preferred_element_type=jnp.float32)               # (B, S, D) f32

    inv_l = pl.reciprocal(l, approx=True)            # EUP slot, ~free
    out = pv.reshape(B * S, D) * inv_l
    o_ref[...] = out.reshape(B, S, D).astype(o_ref.dtype)


def sdpa_pallas(x1, key):
    """out[b,h] = softmax(x1[b,h] @ key[h]^T / sqrt(key.shape[1])) @ x1[b,h]."""
    B, H, S, D = x1.shape
    Hk, Sk, Dk = key.shape
    assert (Hk, Sk, Dk) == (H, S, D), "key must be (H, S, D) to broadcast over batch"
    assert D % 128 == 0 and S % 8 == 0 and (B * S) % 8 == 0

    scale = 1.0 / math.sqrt(float(key.shape[1]))     # matches sqrt(k.size(1)) in torch
    key_t = jnp.swapaxes(key, 1, 2)                  # (H, D, S): one-time transpose,
                                                     # reused across all B batches/head

    kernel = functools.partial(_sdpa_head_kernel, scale=scale)

    return pl.pallas_call(
        kernel,
        out_shape=jax.ShapeDtypeStruct((B, H, S, D), x1.dtype),
        grid=(H,),                                   # 4 parallel steps (feeds both v7x TCs)
        in_specs=[
            # x1: whole (B, S, D) slab for this head; squeeze the head dim
            pl.BlockSpec((B, None, S, D), lambda h: (0, h, 0, 0)),
            # key^T: (D, S) tile for this head
            pl.BlockSpec((None, D, S), lambda h: (h, 0, 0)),
        ],
        out_specs=pl.BlockSpec((B, None, S, D), lambda h: (0, h, 0, 0)),
        compiler_params=pltpu.CompilerParams(
            dimension_semantics=("parallel",)),
    )(x1, key_t)


def sdpa_reference(x1, key):
    """Pure-JAX f32 reference with identical semantics (for correctness check)."""
    scale = 1.0 / jnp.sqrt(jnp.float32(key.shape[1]))
    s = jnp.einsum("bhsd,hkd->bhsk", x1, key,
                   preferred_element_type=jnp.float32) * scale
    p = jax.nn.softmax(s, axis=-1)
    return jnp.einsum("bhsk,bhkd->bhsd", p, x1,
                      preferred_element_type=jnp.float32).astype(x1.dtype)


if __name__ == "__main__":
    B, H, S, D = 2, 4, 128, 128      # key matches the module's (4, 128, 128) exactly
    k0, k1 = jax.random.split(jax.random.PRNGKey(0))
    x1 = jax.random.normal(k0, (B, H, S, D), dtype=jnp.float32)
    key = jax.random.normal(k1, (H, S, D), dtype=jnp.float32)

    out = jax.block_until_ready(jax.jit(sdpa_pallas)(x1, key))
    ref = jax.block_until_ready(sdpa_reference(x1, key))

    max_err = float(jnp.max(jnp.abs(out - ref)))
    assert out.shape == (B, H, S, D)
    # bf16 MXU operands + approx reciprocal vs. f32 reference: standard bf16
    # flash-attention tolerance.
    assert max_err < 2e-2, f"max abs error too large: {max_err}"
    print("KERNEL_OK")
</pallas_src>

<mosaic_0001>
module attributes {stable_mosaic.version = 11 : i64} {
  func.func @_sdpa_head_kernel(%arg0: i32, %arg1: memref<2x1x128x128xf32, #tpu.memory_space<vmem>>, %arg2: memref<1x128x128xf32, #tpu.memory_space<vmem>>, %arg3: memref<2x1x128x128xf32, #tpu.memory_space<vmem>>) attributes {dimension_semantics = [#tpu.dimension_semantics<parallel>], iteration_bounds = array<i64: 4>, scalar_prefetch = 0 : i64, scratch_operands = 0 : i64, tpu.core_type = #tpu.core_type<tc>, window_params = [{transform_indices = @transform_0, window_bounds = array<i64: 2, 1, 128, 128>}, {transform_indices = @transform_1, window_bounds = array<i64: 1, 128, 128>}, {transform_indices = @transform_2, window_bounds = array<i64: 2, 1, 128, 128>}]} {
    %c0 = arith.constant 0 : index
    %c0_0 = arith.constant 0 : index
    %c0_1 = arith.constant 0 : index
    %c0_2 = arith.constant 0 : index
    %0 = vector.load %arg1[%c0, %c0_0, %c0_1, %c0_2] : memref<2x1x128x128xf32, #tpu.memory_space<vmem>>, vector<2x1x128x128xf32>
    %1 = vector.shape_cast %0 : vector<2x1x128x128xf32> to vector<2x128x128xf32>
    %2 = vector.shape_cast %1 : vector<2x128x128xf32> to vector<256x128xf32>
    %3 = arith.truncf %2 : vector<256x128xf32> to vector<256x128xbf16>
    %c0_3 = arith.constant 0 : index
    %c0_4 = arith.constant 0 : index
    %c0_5 = arith.constant 0 : index
    %4 = vector.load %arg2[%c0_3, %c0_4, %c0_5] : memref<1x128x128xf32, #tpu.memory_space<vmem>>, vector<1x128x128xf32>
    %5 = vector.shape_cast %4 : vector<1x128x128xf32> to vector<128x128xf32>
    %6 = arith.truncf %5 : vector<128x128xf32> to vector<128x128xbf16>
    %cst = arith.constant dense<0.000000e+00> : vector<256x128xf32>
    %7 = tpu.matmul %3, %6, %cst {dimension_numbers = #tpu.dot_dimension_numbers<[1], [0], [0], [1], [0, 0, 1, 1], [], []>} : vector<256x128xbf16>, vector<128x128xbf16>, vector<256x128xf32> -> vector<256x128xf32>
    %cst_6 = arith.constant 0.0883883461 : f32
    %8 = vector.broadcast %cst_6 : f32 to vector<256x128xf32>
    %9 = arith.mulf %7, %8 : vector<256x128xf32>
    %cst_7 = arith.constant dense<0xFF800000> : vector<256xf32>
    %10 = vector.multi_reduction <maximumf>, %9, %cst_7 [1] : vector<256x128xf32> to vector<256xf32>
    %11 = vector.shape_cast %10 : vector<256xf32> to vector<256x1xf32>
    %12 = vector.broadcast %11 : vector<256x1xf32> to vector<256x128xf32>
    %13 = arith.subf %9, %12 : vector<256x128xf32>
    %14 = math.exp %13 : vector<256x128xf32>
    %cst_8 = arith.constant dense<0.000000e+00> : vector<256xf32>
    %15 = vector.multi_reduction <add>, %14, %cst_8 [1] : vector<256x128xf32> to vector<256xf32>
    %16 = vector.shape_cast %15 : vector<256xf32> to vector<256x1xf32>
    %17 = vector.shape_cast %14 : vector<256x128xf32> to vector<2x128x128xf32>
    %18 = arith.truncf %17 : vector<2x128x128xf32> to vector<2x128x128xbf16>
    %19 = arith.truncf %1 : vector<2x128x128xf32> to vector<2x128x128xbf16>
    "tpu.trace_start"() <{level = 10 : i32, message = "bqk,bkd->bqd"}> : () -> ()
    %cst_9 = arith.constant dense<0.000000e+00> : vector<2x128x128xf32>
    %20 = tpu.matmul %18, %19, %cst_9 {dimension_numbers = #tpu.dot_dimension_numbers<[2], [1], [1], [2], [0, 0, 0, 1, 1, 2], [0], [0]>} : vector<2x128x128xbf16>, vector<2x128x128xbf16>, vector<2x128x128xf32> -> vector<2x128x128xf32>
    "tpu.trace_stop"() : () -> ()
    %21 = tpu.reciprocal %16 {approx = true} : vector<256x1xf32> -> vector<256x1xf32>
    %22 = vector.shape_cast %20 : vector<2x128x128xf32> to vector<256x128xf32>
    %23 = vector.broadcast %21 : vector<256x1xf32> to vector<256x128xf32>
    %24 = arith.mulf %22, %23 : vector<256x128xf32>
    %25 = vector.shape_cast %24 : vector<256x128xf32> to vector<2x128x128xf32>
    %c0_10 = arith.constant 0 : index
    %c0_11 = arith.constant 0 : index
    %c0_12 = arith.constant 0 : index
    %c0_13 = arith.constant 0 : index
    %26 = vector.load %arg3[%c0_10, %c0_11, %c0_12, %c0_13] : memref<2x1x128x128xf32, #tpu.memory_space<vmem>>, vector<2x1x128x128xf32>
    %27 = vector.shape_cast %26 : vector<2x1x128x128xf32> to vector<2x128x128xf32>
    %28 = vector.shape_cast %25 : vector<2x128x128xf32> to vector<2x1x128x128xf32>
    tpu.vector_store %arg3[%c0_10, %c0_11, %c0_12, %c0_13], %28 {strides = array<i32>} : memref<2x1x128x128xf32, #tpu.memory_space<vmem>>, vector<2x1x128x128xf32>,
    return
  }
  func.func @transform_0(%arg0: i32) -> (i32, i32, i32, i32) {
    %c0_i32 = arith.constant 0 : i32
    %c0_i32_0 = arith.constant 0 : i32
    %c0_i32_1 = arith.constant 0 : i32
    %c0_i32_2 = arith.constant 0 : i32
    return %c0_i32, %arg0, %c0_i32_0, %c0_i32_1 : i32, i32, i32, i32
  }
  func.func @transform_1(%arg0: i32) -> (i32, i32, i32) {
    %c0_i32 = arith.constant 0 : i32
    %c0_i32_0 = arith.constant 0 : i32
    %c0_i32_1 = arith.constant 0 : i32
    return %arg0, %c0_i32, %c0_i32_0 : i32, i32, i32
  }
  func.func @transform_2(%arg0: i32) -> (i32, i32, i32, i32) {
    %c0_i32 = arith.constant 0 : i32
    %c0_i32_0 = arith.constant 0 : i32
    %c0_i32_1 = arith.constant 0 : i32
    %c0_i32_2 = arith.constant 0 : i32
    return %c0_i32, %arg0, %c0_i32_0, %c0_i32_1 : i32, i32, i32, i32
  }
}

</mosaic_0001>

<bundles_post_ra>
// kernel: sdpa_pallas.1
= control target key start
LH: loop header
LB: loop body
LE: loop exit
PB: predicated region body
PF: predicated region fallthrough
CT: control target
= control target key end

     0   :  { %7 = vsyncpa [#allocation4], 0  ;;  %s2120_s0 = inlined_call_operand.vmem [shape: f32[2,4,128,128], index: 0, kind: input, shape index: {}]   ;;  %s2121_s1 = inlined_call_operand.vmem [shape: f32[4,128,128], index: 1, kind: input, shape index: {}]   ;;  %s2122_s2 = inlined_call_operand.hbm [shape: f32[2,4,128,128], index: 2, kind: output, shape index: {}]  }
   0x1   :  { %9 = vsyncpa [#allocation4 + $0x1], 0  ;;  %s1573_s9 = smov 0   ;;  %s1575_s10 = smov 0  }
   0x2   :  { %s1577_s11 = smov 0   ;;  %s1579_s12 = smov 0  }
   0x3 LB: > { %s1594_s13 = sadd.s32 4294967295, %s1549_s12   ;;  %s1308_s14 = sadd.s32 4294967294, %s1549_s12   ;;  %s1549_s12 = sphi %s1579_s12, %s2128_s12   ;;  %s1545_s11 = sphi %s1577_s11, %s2127_s11   ;;  %s1541_s10 = sphi %s1575_s10, %s2126_s10   ;;  %s1537_s9 = sphi %s1573_s9, %s2125_s9  }
   0x4   : > { %s1598_s15 = sadd.s32 1, %s1549_s12   ;;  %s22_s16 = sadd.s32 1, %s1545_s11 }
   0x5   : > { %s19_s17 = ssub.s32 %s1549_s12, %s1598_s15  ;;  %p29_p0 = scmp.ne.s32.totalorder %s1545_s11, %s1541_s10 }
   0x6   : > { %p20_p1 = scmp.eq.s32.totalorder %s19_s17, 0  ;;  %p30_p2 = scmp.eq.s32.totalorder %s1549_s12, 0 }
   0x7   : > { %p85_p3 = scmp.eq.s32.totalorder %s1594_s13, 3  ;;  %p90_p4 = scmp.ne.s32.totalorder %s1541_s10, %s1537_s9 }
   0x8   : > { %s1610_s18 = scalar_select %p20_p1, %s1545_s11, %s22_s16  }
   0x9   : > { %p31_p5 = por %p30_p2, %p29_p0  ;;  %p1612_p6 = por %p85_p3, %p29_p0 }
   0xa   : > { %p91_p7 = scmp.eq.s32.totalorder %s1308_s14, 3  ;;  %p1310_p9 = scmp.ge.s32.totalorder %s1549_s12, 4 }
   0xc   : > { %p1616_p8 = por %p91_p7, %p90_p4  ;;  %107 = sbr.rel (%p1310_p9) target bundleno = 53 (0x35), region = 16 }
  0x11   : > { %110 = sbr.rel (!%p31_p5) target bundleno = 53 (0x35), region = 20  ;;  %s112_s21 = sand.u32 (%p31_p5), 1, %s1545_s11  }
  0x12   : > { %s1324_s22 = sshll.u32 (%p31_p5), %s1549_s12, 7  ;;  %s1311_s23 = sshll.u32 (%p31_p5), %s112_s21, 8 }
  0x13   : > { %s1626_s26 = scalar_lea.vmem (%p31_p5), %s2120_s0, %s1324_s22  ;;  %s1631_s27 = scalar_lea.vmem (%p31_p5), [#allocation2], %s1311_s23 }
  0x14   : > { %v208_v0 = vld [vmem:[%s1626_s26] sm:$0xff] (%p31_p5)  ;;  %v210_v1 = vld [vmem:[%s1626_s26 + $0x8] sm:$0xff] (%p31_p5)  ;;  %v212_v2 = vld [vmem:[%s1626_s26 + $0x10] sm:$0xff] (%p31_p5) }
  0x15   : > { %209 = vst [vmem:[%s1631_s27] sm:$0xff] (%p31_p5), %v208_v0  ;;  %v214_v3 = vld [vmem:[%s1626_s26 + $0x18] sm:$0xff] (%p31_p5)  ;;  %v216_v4 = vld [vmem:[%s1626_s26 + $0x20] sm:$0xff] (%p31_p5)  ;;  %v218_v5 = vld [vmem:[%s1626_s26 + $0x28] sm:$0xff] (%p31_p5) }
  0x16   : > { %211 = vst [vmem:[%s1631_s27 + $0x8] sm:$0xff] %v210_v1  ;;  %v220_v6 = vld [vmem:[%s1626_s26 + $0x30] sm:$0xff]  ;;  %v222_v7 = vld [vmem:[%s1626_s26 + $0x38] sm:$0xff]  ;;  %v224_v8 = vld [vmem:[%s1626_s26 + $0x40] sm:$0xff] }
  0x17   : > { %213 = vst [vmem:[%s1631_s27 + $0x10] sm:$0xff] %v212_v2  ;;  %v226_v9 = vld [vmem:[%s1626_s26 + $0x48] sm:$0xff]  ;;  %v228_v10 = vld [vmem:[%s1626_s26 + $0x50] sm:$0xff]  ;;  %v230_v11 = vld [vmem:[%s1626_s26 + $0x58] sm:$0xff] }
  0x18   : > { %215 = vst [vmem:[%s1631_s27 + $0x18] sm:$0xff] %v214_v3  ;;  %v232_v12 = vld [vmem:[%s1626_s26 + $0x60] sm:$0xff]  ;;  %v234_v13 = vld [vmem:[%s1626_s26 + $0x68] sm:$0xff]  ;;  %v236_v14 = vld [vmem:[%s1626_s26 + $0x70] sm:$0xff] }
  0x19   : > { %217 = vst [vmem:[%s1631_s27 + $0x20] sm:$0xff] %v216_v4  ;;  %v238_v15 = vld [vmem:[%s1626_s26 + $0x78] sm:$0xff]  ;;  %v240_v16 = vld [vmem:[%s1626_s26 + $0x200] sm:$0xff]  ;;  %v242_v17 = vld [vmem:[%s1626_s26 + $0x208] sm:$0xff] }
  0x1a   : > { %219 = vst [vmem:[%s1631_s27 + $0x28] sm:$0xff] %v218_v5  ;;  %v244_v18 = vld [vmem:[%s1626_s26 + $0x210] sm:$0xff]  ;;  %v246_v19 = vld [vmem:[%s1626_s26 + $0x218] sm:$0xff]  ;;  %v248_v20 = vld [vmem:[%s1626_s26 + $0x220] sm:$0xff] }
  0x1b   : > { %221 = vst [vmem:[%s1631_s27 + $0x30] sm:$0xff] %v220_v6  ;;  %v250_v21 = vld [vmem:[%s1626_s26 + $0x228] sm:$0xff]  ;;  %v252_v22 = vld [vmem:[%s1626_s26 + $0x230] sm:$0xff]  ;;  %v254_v23 = vld [vmem:[%s1626_s26 + $0x238] sm:$0xff] }
  0x1c   : > { %223 = vst [vmem:[%s1631_s27 + $0x38] sm:$0xff] %v222_v7  ;;  %v256_v24 = vld [vmem:[%s1626_s26 + $0x240] sm:$0xff]  ;;  %v258_v25 = vld [vmem:[%s1626_s26 + $0x248] sm:$0xff]  ;;  %v260_v26 = vld [vmem:[%s1626_s26 + $0x250] sm:$0xff] }
  0x1d   : > { %225 = vst [vmem:[%s1631_s27 + $0x40] sm:$0xff] %v224_v8  ;;  %v262_v27 = vld [vmem:[%s1626_s26 + $0x258] sm:$0xff]  ;;  %v264_v28 = vld [vmem:[%s1626_s26 + $0x260] sm:$0xff]  ;;  %v266_v29 = vld [vmem:[%s1626_s26 + $0x268] sm:$0xff] }
  0x1e   : > { %227 = vst [vmem:[%s1631_s27 + $0x48] sm:$0xff] %v226_v9  ;;  %v268_v30 = vld [vmem:[%s1626_s26 + $0x270] sm:$0xff]  ;;  %v270_v31 = vld [vmem:[%s1626_s26 + $0x278] sm:$0xff] }
  0x1f   : > { %229 = vst [vmem:[%s1631_s27 + $0x50] sm:$0xff] %v228_v10 }
  0x20   : > { %231 = vst [vmem:[%s1631_s27 + $0x58] sm:$0xff] %v230_v11 }
  0x21   : > { %233 = vst [vmem:[%s1631_s27 + $0x60] sm:$0xff] %v232_v12 }
  0x22   : > { %235 = vst [vmem:[%s1631_s27 + $0x68] sm:$0xff] %v234_v13 }
  0x23   : > { %237 = vst [vmem:[%s1631_s27 + $0x70] sm:$0xff] %v236_v14 }
  0x24   : > { %239 = vst [vmem:[%s1631_s27 + $0x78] sm:$0xff] %v238_v15 }
  0x25   : > { %241 = vst [vmem:[%s1631_s27 + $0x80] sm:$0xff] %v240_v16 }
  0x26   : > { %243 = vst [vmem:[%s1631_s27 + $0x88] sm:$0xff] %v242_v17 }
  0x27   : > { %245 = vst [vmem:[%s1631_s27 + $0x90] sm:$0xff] %v244_v18 }
  0x28   : > { %247 = vst [vmem:[%s1631_s27 + $0x98] sm:$0xff] %v246_v19 }
  0x29   : > { %249 = vst [vmem:[%s1631_s27 + $0xa0] sm:$0xff] %v248_v20 }
  0x2a   : > { %251 = vst [vmem:[%s1631_s27 + $0xa8] sm:$0xff] %v250_v21 }
  0x2b   : > { %253 = vst [vmem:[%s1631_s27 + $0xb0] sm:$0xff] %v252_v22 }
  0x2c   : > { %255 = vst [vmem:[%s1631_s27 + $0xb8] sm:$0xff] %v254_v23 }
  0x2d   : > { %257 = vst [vmem:[%s1631_s27 + $0xc0] sm:$0xff] %v256_v24 }
  0x2e   : > { %259 = vst [vmem:[%s1631_s27 + $0xc8] sm:$0xff] %v258_v25 }
  0x2f   : > { %261 = vst [vmem:[%s1631_s27 + $0xd0] sm:$0xff] %v260_v26 }
  0x30   : > { %263 = vst [vmem:[%s1631_s27 + $0xd8] sm:$0xff] %v262_v27 }
  0x31   : > { %265 = vst [vmem:[%s1631_s27 + $0xe0] sm:$0xff] %v264_v28 }
  0x32   : > { %267 = vst [vmem:[%s1631_s27 + $0xe8] sm:$0xff] %v266_v29 }
  0x33   : > { %269 = vst [vmem:[%s1631_s27 + $0xf0] sm:$0xff] %v268_v30 }
  0x34   : > { %271 = vst [vmem:[%s1631_s27 + $0xf8] sm:$0xff] %v270_v31 }
  0x35 PF: > { %p1314_p10 = scmp.ge.s32.totalorder %s1549_s12, 1  ;;  %p284_p11 = scmp.lt.s32.totalorder %s1549_s12, 5 }
  0x37   : > { %p285_p12 = pnand %p1314_p10, %p284_p11 }
  0x38   : > { %p317_p13 = scmp.lt.s32.totalorder (!%p285_p12), %s1594_s13, 3  ;;  %s291_s28 = sand.u32 (!%p285_p12), 1, %s1541_s10  }
  0x39   : > { %288 = sbr.rel (%p285_p12) target bundleno = 640 (0x280), region = 62  ;;  %s1720_s6 = sshll.u32 (!%p285_p12), %s291_s28, 8 }
  0x3a   : > { %s1725_s7 = scalar_lea.vmem (!%p285_p12), [#allocation2], %s1720_s6  ;;  %s2048_s8 = scalar_lea.vmem (!%p285_p12), [#allocation3], %s1720_s6 }
  0x3b   : > { %s1190_s14 = scalar_lea.sflag (!%p285_p12), [#allocation4], %s291_s28 }
  0x3e   : > { %s318_s29 = scalar_select %p317_p13, %s1594_s13, 3  ;;  %v1728_v55 = vld [vmem:[%s1725_s7] sm:$0xff]  ;;  %v1731_v57 = vld [vmem:[%s1725_s7 + $0x8] sm:$0xff]  ;;  %v1744_v62 = vld [vmem:[%s1725_s7 + $0x10] sm:$0xff] }
  0x3f   : > { %v1734_v58 = vld [vmem:[%s1725_s7 + $0x80] sm:$0xff]  ;;  %v1737_v59 = vld [vmem:[%s1725_s7 + $0x88] sm:$0xff]  ;;  %v354_v60 = vpack.c.bf16 %v1731_v57, %v1728_v55  ;;  %v1747_v63 = vld [vmem:[%s1725_s7 + $0x18] sm:$0xff] }
  0x40   : > { %s1325_s30 = sshll.u32 %s318_s29, 7  ;;  %v362_v61 = vpack.c.bf16 %v1737_v59, %v1734_v58  ;;  %v1750_v0 = vld [vmem:[%s1725_s7 + $0x90] sm:$0xff]  ;;  %v1753_v1 = vld [vmem:[%s1725_s7 + $0x98] sm:$0xff]  ;;  %v355_v2 = vpack.c.bf16 %v1747_v63, %v1744_v62  ;;  %v1760_v4 = vld [vmem:[%s1725_s7 + $0x20] sm:$0xff] }
  0x41   : > { %s1702_s5 = scalar_lea.vmem %s2121_s1, %s1325_s30  ;;  %v363_v3 = vpack.c.bf16 %v1753_v1, %v1750_v0  ;;  %v1763_v5 = vld [vmem:[%s1725_s7 + $0x28] sm:$0xff]  ;;  %v1766_v6 = vld [vmem:[%s1725_s7 + $0xa0] sm:$0xff]  ;;  %v1776_v10 = vld [vmem:[%s1725_s7 + $0xb0] sm:$0xff] }
  0x42   : > { %v384_v32 = vld [vmem:[%s1702_s5 + $0x70] sm:$0xff]  ;;  %v385_v33 = vld [vmem:[%s1702_s5 + $0x78] sm:$0xff]  ;;  %v382_v34 = vld [vmem:[%s1702_s5 + $0x60] sm:$0xff]  ;;  %v356_v8 = vpack.c.bf16 %v1763_v5, %v1760_v4 }
  0x43   : > { %v393_v35 = vpack.c.bf16 %v385_v33, %v384_v32  ;;  %v383_v36 = vld [vmem:[%s1702_s5 + $0x68] sm:$0xff]  ;;  %v380_v38 = vld [vmem:[%s1702_s5 + $0x50] sm:$0xff]  ;;  %v381_v39 = vld [vmem:[%s1702_s5 + $0x58] sm:$0xff] }
  0x44   : > { %v392_v37 = vpack.c.bf16 %v383_v36, %v382_v34  ;;  %v391_v40 = vpack.c.bf16 %v381_v39, %v380_v38  ;;  %v378_v41 = vld [vmem:[%s1702_s5 + $0x40] sm:$0xff]  ;;  %v379_v42 = vld [vmem:[%s1702_s5 + $0x48] sm:$0xff]  ;;  %v376_v44 = vld [vmem:[%s1702_s5 + $0x30] sm:$0xff] }
  0x45   : > { %394 = vmatpush.bf16.msra.mxu0 %v393_v35  ;;  %1327 = vmatpush.bf16.msra.mxu3 %v393_v35  ;;  %v390_v43 = vpack.c.bf16 %v379_v42, %v378_v41  ;;  %v377_v45 = vld [vmem:[%s1702_s5 + $0x38] sm:$0xff]  ;;  %v374_v47 = vld [vmem:[%s1702_s5 + $0x20] sm:$0xff]  ;;  %v375_v48 = vld [vmem:[%s1702_s5 + $0x28] sm:$0xff] }
  0x46   : > { %v389_v46 = vpack.c.bf16 %v377_v45, %v376_v44  ;;  %v388_v49 = vpack.c.bf16 %v375_v48, %v374_v47  ;;  %v372_v50 = vld [vmem:[%s1702_s5 + $0x10] sm:$0xff]  ;;  %v373_v51 = vld [vmem:[%s1702_s5 + $0x18] sm:$0xff]  ;;  %v370_v53 = vld [vmem:[%s1702_s5] sm:$0xff] }
  0x47   : > { %v387_v52 = vpack.c.bf16 %v373_v51, %v372_v50  ;;  %v371_v54 = vld [vmem:[%s1702_s5 + $0x8] sm:$0xff]  ;;  %v1779_v11 = vld [vmem:[%s1725_s7 + $0xb8] sm:$0xff]  ;;  %v1782_v12 = vld [vmem:[%s1725_s7 + $0x30] sm:$0xff] }
  0x48   : > { %v386_v56 = vpack.c.bf16 %v371_v54, %v370_v53  ;;  %v1769_v7 = vld [vmem:[%s1725_s7 + $0xa8] sm:$0xff]  ;;  %v1785_v13 = vld [vmem:[%s1725_s7 + $0x38] sm:$0xff]  ;;  %v365_v14 = vpack.c.bf16 %v1779_v11, %v1776_v10  ;;  %v1792_v16 = vld [vmem:[%s1725_s7 + $0xc0] sm:$0xff] }
  0x49   : > { %395 = vmatpush.bf16.msra.mxu0 %v392_v37  ;;  %1328 = vmatpush.bf16.msra.mxu3 %v392_v37  ;;  %v364_v9 = vpack.c.bf16 %v1769_v7, %v1766_v6  ;;  %v357_v15 = vpack.c.bf16 %v1785_v13, %v1782_v12  ;;  %v1795_v17 = vld [vmem:[%s1725_s7 + $0xc8] sm:$0xff]  ;;  %v1798_v18 = vld [vmem:[%s1725_s7 + $0x40] sm:$0xff]  ;;  %v1808_v22 = vld [vmem:[%s1725_s7 + $0xd0] sm:$0xff] }
  0x4a   : > { %v1801_v19 = vld [vmem:[%s1725_s7 + $0x48] sm:$0xff]  ;;  %v366_v20 = vpack.c.bf16 %v1795_v17, %v1792_v16  ;;  %v1811_v23 = vld [vmem:[%s1725_s7 + $0xd8] sm:$0xff]  ;;  %v1814_v24 = vld [vmem:[%s1725_s7 + $0x50] sm:$0xff] }
  0x4b   : > { %v358_v21 = vpack.c.bf16 %v1801_v19, %v1798_v18  ;;  %v1817_v25 = vld [vmem:[%s1725_s7 + $0x58] sm:$0xff]  ;;  %v367_v26 = vpack.c.bf16 %v1811_v23, %v1808_v22  ;;  %v1824_v28 = vld [vmem:[%s1725_s7 + $0xe0] sm:$0xff]  ;;  %v1827_v29 = vld [vmem:[%s1725_s7 + $0xe8] sm:$0xff] }
  0x4c   : > { %v359_v27 = vpack.c.bf16 %v1817_v25, %v1814_v24  ;;  %v1830_v30 = vld [vmem:[%s1725_s7 + $0x60] sm:$0xff]  ;;  %v1833_v31 = vld [vmem:[%s1725_s7 + $0x68] sm:$0xff]  ;;  %v368_v32 = vpack.c.bf16 %v1827_v29, %v1824_v28  ;;  %v1840_v34 = vld [vmem:[%s1725_s7 + $0xf0] sm:$0xff] }
  0x4d   : > { %396 = vmatpush.bf16.msra.mxu0 %v391_v40  ;;  %1329 = vmatpush.bf16.msra.mxu3 %v391_v40  ;;  %v360_v33 = vpack.c.bf16 %v1833_v31, %v1830_v30  ;;  %v1843_v35 = vld [vmem:[%s1725_s7 + $0xf8] sm:$0xff]  ;;  %v1846_v36 = vld [vmem:[%s1725_s7 + $0x70] sm:$0xff] }
  0x4e   : > { %v1849_v37 = vld [vmem:[%s1725_s7 + $0x78] sm:$0xff]  ;;  %v369_v38 = vpack.c.bf16 %v1843_v35, %v1840_v34 }
  0x4f   : > { %v361_v39 = vpack.c.bf16 %v1849_v37, %v1846_v36 }
  0x51   : > { %397 = vmatpush.bf16.msra.mxu0 %v390_v43  ;;  %1330 = vmatpush.bf16.msra.mxu3 %v390_v43 }
  0x55   : > { %398 = vmatpush.bf16.msra.mxu0 %v389_v46  ;;  %1331 = vmatpush.bf16.msra.mxu3 %v389_v46 }
  0x59   : > { %399 = vmatpush.bf16.msra.mxu0 %v388_v49  ;;  %1332 = vmatpush.bf16.msra.mxu3 %v388_v49 }
  0x5d   : > { %400 = vmatpush.bf16.msra.mxu0 %v387_v52  ;;  %1333 = vmatpush.bf16.msra.mxu3 %v387_v52 }
  0x61   : > { %401 = vmatpush.bf16.msra.mxu0 %v386_v56  ;;  %1334 = vmatpush.bf16.msra.mxu3 %v386_v56 }
  0x64   : > { %402 = vmatmul.bf16.vlgmr.msra.gmra.mxu0 %v354_v60  ;;  %442 = vmatmul.bf16.vlgmr.msra.gmra.mxu3 %v362_v61 }
  0x74   : > { %407 = vmatmul.bf16.gmra.mxu0 %v355_v2  ;;  %447 = vmatmul.bf16.gmra.mxu3 %v363_v3 }
  0x84   : > { %412 = vmatmul.bf16.gmra.mxu0 %v356_v8  ;;  %452 = vmatmul.bf16.gmra.mxu3 %v364_v9 }
  0x94   : > { %457 = vmatmul.bf16.gmra.mxu3 %v365_v14  ;;  %417 = vmatmul.bf16.gmra.mxu0 %v357_v15 }
  0xa4   : > { %462 = vmatmul.bf16.gmra.mxu3 %v366_v20  ;;  %422 = vmatmul.bf16.gmra.mxu0 %v358_v21 }
  0xb4   : > { %467 = vmatmul.bf16.gmra.mxu3 %v367_v26  ;;  %427 = vmatmul.bf16.gmra.mxu0 %v359_v27 }
  0xc4   : > { %472 = vmatmul.bf16.gmra.mxu3 %v368_v32  ;;  %432 = vmatmul.bf16.gmra.mxu0 %v360_v33 }
  0xd4   : > { %477 = vmatmul.bf16.gmra.mxu3 %v369_v38  ;;  %437 = vmatmul.bf16.gmra.mxu0 %v361_v39 }
  0xe1   : > { %v403_v40 = vpop.f32.mrf.mxu0 }
  0xe2   : > { %v1855_v41 = vmul.f32 0.088388346, %v403_v40 }
  0xe4   : > { %515 = vmax.xlane.f32.xlu1 %v1855_v41 }
  0xe7   : > { %v443_v42 = vpop.f32.mrf.mxu3 }
  0xe8   : > { %v1858_v43 = vmul.f32 0.088388346, %v443_v42 }
  0xe9   : > { %v405_v44 = vpop.f32.mrf.mxu0 }
  0xea   : > { %v1860_v45 = vmul.f32 0.088388346, %v405_v44  ;;  %547 = vmax.xlane.f32.xlu0 %v1858_v43 }
  0xec   : > { %517 = vmax.xlane.f32.xlu1 %v1860_v45 }
  0xef   : > { %v445_v46 = vpop.f32.mrf.mxu3 }
  0xf0   : > { %v1864_v47 = vmul.f32 0.088388346, %v445_v46 }
  0xf1   : > { %v408_v48 = vpop.f32.mrf.mxu0 }
  0xf2   : > { %549 = vmax.xlane.f32.xlu0 %v1864_v47  ;;  %v1867_v49 = vmul.f32 0.088388346, %v408_v48 }
  0xf7   : > { %v448_v50 = vpop.f32.mrf.mxu3 }
  0xf8   : > { %v1869_v51 = vmul.f32 0.088388346, %v448_v50  ;;  %v785_v50 = vpack.c.bf16 %v1846_v36, %v1846_v36  ;;  %v781_v36 = vpack.c.bf16 %v1814_v24, %v1814_v24  ;;  %v799_v24 = vpack.c.bf16 %v1824_v28, %v1824_v28 }
  0xf9   : > { %v410_v52 = vpop.f32.mrf.mxu0  ;;  %v798_v28 = vpack.c.bf16 %v1811_v23, %v1811_v23 }
  0xfa   : > { %v1871_v53 = vmul.f32 0.088388346, %v410_v52  ;;  %551 = vmax.xlane.f32.xlu2 %v1869_v51  ;;  %519 = vmax.xlane.f32.xlu0 %v1867_v49  ;;  %v786_v52 = vpack.c.bf16 %v1849_v37, %v1849_v37  ;;  %v782_v37 = vpack.c.bf16 %v1817_v25, %v1817_v25 }
  0xfc   : > { %521 = vmax.xlane.f32.xlu1 %v1871_v53 }
  0xff   : > { %v450_v54 = vpop.f32.mrf.mxu3 }
 0x100   : > { %v1876_v56 = vmul.f32 0.088388346, %v450_v54  ;;  %v783_v54 = vpack.c.bf16 %v1830_v30, %v1830_v30 }
 0x101   : > { %v413_v60 = vpop.f32.mrf.mxu0 }
 0x102   : > { %v1878_v61 = vmul.f32 0.088388346, %v413_v60  ;;  %553 = vmax.xlane.f32.xlu2 %v1876_v56  ;;  %v784_v60 = vpack.c.bf16 %v1833_v31, %v1833_v31  ;;  %v879_v30 = vunpack.c.l.b16 %v783_v54 }
 0x104   : > { %523 = vmax.xlane.f32.xlu1 %v1878_v61  ;;  %v880_v31 = vunpack.c.l.b16 %v784_v60  ;;  %v780_v60 = vpack.c.bf16 %v1801_v19, %v1801_v19  ;;  %v777_v19 = vpack.c.bf16 %v1782_v12, %v1782_v12 }
 0x106   : > { %v889_v25 = vpack.c.b16 %v880_v31, %v879_v30  ;;  %v1024_v30 = vunpack.c.l.b16 %v799_v24 }
 0x107   : > { %v453_v2 = vpop.f32.mrf.mxu3 }
 0x108   : > { %v1882_v3 = vmul.f32 0.088388346, %v453_v2  ;;  %v881_v2 = vunpack.c.l.b16 %v785_v50 }
 0x109   : > { %v415_v8 = vpop.f32.mrf.mxu0 }
 0x10a   : > { %555 = vmax.xlane.f32.xlu2 %v1882_v3  ;;  %v1885_v14 = vmul.f32 0.088388346, %v415_v8  ;;  %v882_v8 = vunpack.c.l.b16 %v786_v52  ;;  %v779_v52 = vpack.c.bf16 %v1798_v18, %v1798_v18 }
 0x10c   : > { %v875_v23 = vunpack.c.l.b16 %v779_v52  ;;  %v873_v52 = vunpack.c.l.b16 %v777_v19 }
 0x10f   : > { %v455_v9 = vpop.f32.mrf.mxu3 }
 0x110   : > { %v1887_v15 = vmul.f32 0.088388346, %v455_v9 }
 0x111   : > { %v418_v20 = vpop.f32.mrf.mxu0 }
 0x112   : > { %557 = vmax.xlane.f32.xlu0 %v1887_v15  ;;  %525 = vmax.xlane.f32.xlu2 %v1885_v14  ;;  %v1891_v21 = vmul.f32 0.088388346, %v418_v20 }
 0x117   : > { %v458_v26 = vpop.f32.mrf.mxu3 }
 0x118   : > { %v1893_v27 = vmul.f32 0.088388346, %v458_v26 }
 0x119   : > { %v420_v32 = vpop.f32.mrf.mxu0 }
 0x11a   : > { %559 = vmax.xlane.f32.xlu0 %v1893_v27  ;;  %527 = vmax.xlane.f32.xlu2 %v1891_v21  ;;  %v1897_v38 = vmul.f32 0.088388346, %v420_v32  ;;  %v890_v32 = vpack.c.b16 %v882_v8, %v881_v2  ;;  %v877_v2 = vunpack.c.l.b16 %v781_v36  ;;  %v878_v8 = vunpack.c.l.b16 %v782_v37 }
 0x11b   : > { %v778_v36 = vpack.c.bf16 %v1785_v13, %v1785_v13  ;;  %v876_v37 = vunpack.c.l.b16 %v780_v60  ;;  %v775_v13 = vpack.c.bf16 %v1760_v4, %v1760_v4  ;;  %v794_v60 = vpack.c.bf16 %v1779_v11, %v1779_v11 }
 0x11c   : > { %899 = vmatpush.bf16.msra.mxu1 %v890_v32  ;;  %v888_v18 = vpack.c.b16 %v878_v8, %v877_v2 }
 0x11d   : > { %v887_v12 = vpack.c.b16 %v876_v37, %v875_v23  ;;  %v771_v37 = vpack.c.bf16 %v1728_v55, %v1728_v55 }
 0x11f   : > { %v460_v33 = vpop.f32.mrf.mxu3 }
 0x120   : > { %v1899_v39 = vmul.f32 0.088388346, %v460_v33  ;;  %900 = vmatpush.bf16.msra.mxu1 %v889_v25  ;;  %v776_v25 = vpack.c.bf16 %v1763_v5, %v1763_v5  ;;  %v773_v5 = vpack.c.bf16 %v1744_v62, %v1744_v62 }
 0x121   : > { %v423_v40 = vpop.f32.mrf.mxu0 }
 0x122   : > { %561 = vmax.xlane.f32.xlu1 %v1899_v39  ;;  %529 = vmax.xlane.f32.xlu0 %v1897_v38  ;;  %v1903_v42 = vmul.f32 0.088388346, %v423_v40  ;;  %v801_v40 = vpack.c.bf16 %v1840_v34, %v1840_v34 }
 0x124   : > { %v1026_v50 = vunpack.c.l.b16 %v801_v40  ;;  %v795_v40 = vpack.c.bf16 %v1792_v16, %v1792_v16  ;;  %901 = vmatpush.bf16.msra.mxu1 %v888_v18  ;;  %v793_v16 = vpack.c.bf16 %v1776_v10, %v1776_v10  ;;  %v774_v10 = vpack.c.bf16 %v1747_v63, %v1747_v63 }
 0x125   : > { %v872_v18 = vunpack.c.l.b16 %v776_v25 }
 0x126   : > { %v1018_v19 = vunpack.c.l.b16 %v793_v16  ;;  %v870_v23 = vunpack.c.l.b16 %v774_v10 }
 0x127   : > { %v463_v44 = vpop.f32.mrf.mxu3 }
 0x128   : > { %v1905_v46 = vmul.f32 0.088388346, %v463_v44  ;;  %v802_v44 = vpack.c.bf16 %v1843_v35, %v1843_v35  ;;  %v797_v35 = vpack.c.bf16 %v1808_v22, %v1808_v22  ;;  %902 = vmatpush.bf16.msra.mxu1 %v887_v12 }
 0x129   : > { %v425_v48 = vpop.f32.mrf.mxu0 }
 0x12a   : > { %563 = vmax.xlane.f32.xlu1 %v1905_v46  ;;  %531 = vmax.xlane.f32.xlu0 %v1903_v42  ;;  %v1917_v20 = vmul.f32 0.088388346, %v425_v48  ;;  %v800_v48 = vpack.c.bf16 %v1827_v29, %v1827_v29  ;;  %v1027_v54 = vunpack.c.l.b16 %v802_v44  ;;  %v796_v44 = vpack.c.bf16 %v1795_v17, %v1795_v17 }
 0x12b   : > { %v1022_v24 = vunpack.c.l.b16 %v797_v35  ;;  %v1020_v35 = vunpack.c.l.b16 %v795_v40  ;;  %v772_v40 = vpack.c.bf16 %v1731_v57, %v1731_v57  ;;  %v867_v57 = vunpack.c.l.b16 %v771_v37 }
 0x12c   : > { %v1025_v31 = vunpack.c.l.b16 %v800_v48  ;;  %v1023_v48 = vunpack.c.l.b16 %v798_v28  ;;  %v1021_v28 = vunpack.c.l.b16 %v796_v44 }
 0x12e   : > { %v1034_v22 = vpack.c.b16 %v1025_v31, %v1024_v30  ;;  %v1032_v11 = vpack.c.b16 %v1021_v28, %v1020_v35  ;;  %v791_v30 = vpack.c.bf16 %v1766_v6, %v1766_v6  ;;  %v792_v31 = vpack.c.bf16 %v1769_v7, %v1769_v7 }
 0x12f   : > { %v465_v9 = vpop.f32.mrf.mxu3 }
 0x130   : > { %v1919_v26 = vmul.f32 0.088388346, %v465_v9  ;;  %v1035_v9 = vpack.c.b16 %v1027_v54, %v1026_v50  ;;  %v1033_v50 = vpack.c.b16 %v1023_v48, %v1022_v24  ;;  %v874_v54 = vunpack.c.l.b16 %v778_v36 }
 0x131   : > { %v428_v33 = vpop.f32.mrf.mxu0  ;;  %v1016_v12 = vunpack.c.l.b16 %v791_v30  ;;  %v1017_v24 = vunpack.c.l.b16 %v792_v31  ;;  %v789_v48 = vpack.c.bf16 %v1750_v0, %v1750_v0 }
 0x132   : > { %565 = vmax.xlane.f32.xlu2 %v1919_v26  ;;  %533 = vmax.xlane.f32.xlu1 %v1917_v20  ;;  %v1939_v34 = vmul.f32 0.088388346, %v428_v33  ;;  %v886_v4 = vpack.c.b16 %v874_v54, %v873_v52  ;;  %v787_v52 = vpack.c.bf16 %v1734_v58, %v1734_v58  ;;  %v788_v54 = vpack.c.bf16 %v1737_v59, %v1737_v59 }
 0x133   : > { %1044 = vmatpush.bf16.msra.mxu2 %v1035_v9  ;;  %v871_v9 = vunpack.c.l.b16 %v775_v13  ;;  %v790_v13 = vpack.c.bf16 %v1753_v1, %v1753_v1  ;;  %v1030_v55 = vpack.c.b16 %v1017_v24, %v1016_v12  ;;  %v1014_v16 = vunpack.c.l.b16 %v789_v48 }
 0x134   : > { %903 = vmatpush.bf16.msra.mxu1 %v886_v4  ;;  %v1012_v28 = vunpack.c.l.b16 %v787_v52 }
 0x135   : > { %v885_v62 = vpack.c.b16 %v872_v18, %v871_v9  ;;  %v1015_v1 = vunpack.c.l.b16 %v790_v13 }
 0x137   : > { %v468_v29 = vpop.f32.mrf.mxu3  ;;  %1045 = vmatpush.bf16.msra.mxu2 %v1034_v22  ;;  %v869_v22 = vunpack.c.l.b16 %v773_v5  ;;  %v1013_v5 = vunpack.c.l.b16 %v788_v54 }
 0x138   : > { %v1945_v32 = vmul.f32 0.088388346, %v468_v29  ;;  %904 = vmatpush.bf16.msra.mxu1 %v885_v62 }
 0x139   : > { %v430_v33 = vpop.f32.mrf.mxu0  ;;  %v884_v7 = vpack.c.b16 %v870_v23, %v869_v22  ;;  %v1028_v59 = vpack.c.b16 %v1013_v5, %v1012_v28 }
 0x13a   : > { %567 = vmax.xlane.f32.xlu2 %v1945_v32  ;;  %535 = vmax.xlane.f32.xlu1 %v1939_v34  ;;  %v1965_v17 = vmul.f32 0.088388346, %v430_v33  ;;  %v1019_v33 = vunpack.c.l.b16 %v794_v60 }
 0x13b   : > { %1046 = vmatpush.bf16.msra.mxu2 %v1033_v50  ;;  %v868_v50 = vunpack.c.l.b16 %v772_v40 }
 0x13c   : > { %v1031_v63 = vpack.c.b16 %v1019_v33, %v1018_v19  ;;  %905 = vmatpush.bf16.msra.mxu1 %v884_v7 }
 0x13d   : > { %v883_v0 = vpack.c.b16 %v868_v50, %v867_v57 }
 0x13f   : > { %v470_v2 = vpop.f32.mrf.mxu3  ;;  %1047 = vmatpush.bf16.msra.mxu2 %v1032_v11 }
 0x140   : > { %v1967_v8 = vmul.f32 0.088388346, %v470_v2  ;;  %906 = vmatpush.bf16.msra.mxu1 %v883_v0  ;;  %v1029_v2 = vpack.c.b16 %v1015_v1, %v1014_v16 }
 0x141   : > { %v433_v29 = vpop.f32.mrf.mxu0 }
 0x142   : > { %569 = vmax.xlane.f32.xlu0 %v1967_v8  ;;  %537 = vmax.xlane.f32.xlu2 %v1965_v17  ;;  %v1979_v36 = vmul.f32 0.088388346, %v433_v29 }
 0x143   : > { %1048 = vmatpush.bf16.msra.mxu2 %v1031_v63 }
 0x147   : > { %v473_v6 = vpop.f32.mrf.mxu3  ;;  %1049 = vmatpush.bf16.msra.mxu2 %v1030_v55 }
 0x148   : > { %v1985_v44 = vmul.f32 0.088388346, %v473_v6 }
 0x149   : > { %v435_v25 = vpop.f32.mrf.mxu0 }
 0x14a   : > { %571 = vmax.xlane.f32.xlu0 %v1985_v44  ;;  %539 = vmax.xlane.f32.xlu2 %v1979_v36  ;;  %v1997_v4 = vmul.f32 0.088388346, %v435_v25 }
 0x14b   : > { %1050 = vmatpush.bf16.msra.mxu2 %v1029_v2 }
 0x14f   : > { %v475_v60 = vpop.f32.mrf.mxu3  ;;  %1051 = vmatpush.bf16.msra.mxu2 %v1028_v59 }
 0x150   : > { %v1999_v35 = vmul.f32 0.088388346, %v475_v60 }
 0x151   : > { %v438_v58 = vpop.f32.mrf.mxu0 }
 0x152   : > { %573 = vmax.xlane.f32.xlu1 %v1999_v35  ;;  %541 = vmax.xlane.f32.xlu0 %v1997_v4  ;;  %v2003_v29 = vmul.f32 0.088388346, %v438_v58 }
 0x157   : > { %v478_v10 = vpop.f32.mrf.mxu3  ;;  %v516_v11 = vpop.xlane.xlu1 %515 }
 0x158   : > { %v2005_v9 = vmul.f32 0.088388346, %v478_v10  ;;  %v579_v18 = vsub.f32 %v1855_v41, %v516_v11 }
 0x159   : > { %v440_v31 = vpop.f32.mrf.mxu0 }
 0x15a   : > { %575 = vmax.xlane.f32.xlu1 %v2005_v9  ;;  %543 = vmax.xlane.f32.xlu0 %v2003_v29  ;;  %v611_v30 = vmul.f32 1.442695, %v579_v18  ;;  %v2011_v33 = vmul.f32 0.088388346, %v440_v31 }
 0x15c   : > { %1387 = vpow2.f32 %v611_v30 }
 0x15d   : > { %v548_v62 = vpop.xlane.xlu0 %547 }
 0x15e   : > { %v595_v19 = vsub.f32 %v1858_v43, %v548_v62 }
 0x15f   : > { %v480_v63 = vpop.f32.mrf.mxu3  ;;  %v518_v22 = vpop.xlane.xlu1 %517 }
 0x160   : > { %v643_v23 = vmul.f32 1.442695, %v595_v19  ;;  %v2013_v37 = vmul.f32 0.088388346, %v480_v63  ;;  %v580_v40 = vsub.f32 %v1860_v45, %v518_v22 }
 0x162   : > { %1389 = vpow2.f32 %v643_v23  ;;  %v613_v41 = vmul.f32 1.442695, %v580_v40  ;;  %577 = vmax.xlane.f32.xlu2 %v2013_v37  ;;  %545 = vmax.xlane.f32.xlu1 %v2011_v33  ;;  %v1388_v7 = vpop.eup %1387 }
 0x163   : > { %v739_v48 = vpack.c.bf16 %v1388_v7, %v1388_v7 }
 0x164   : > { %1391 = vpow2.f32 %v613_v41 }
 0x165   : > { %v550_v6 = vpop.xlane.xlu0 %549  ;;  %v819_v57 = vunpack.c.l.b16 %v739_v48 }
 0x166   : > { %v596_v43 = vsub.f32 %v1864_v47, %v550_v6 }
 0x168   : > { %v1390_v12 = vpop.eup %1389  ;;  %v645_v24 = vmul.f32 1.442695, %v596_v43 }
 0x169   : > { %707 = vadd.xlane.f32.xlu0 %v1390_v12  ;;  %v755_v1 = vpack.c.bf16 %v1390_v12, %v1390_v12 }
 0x16a   : > { %v1392_v13 = vpop.eup %1391  ;;  %1393 = vpow2.f32 %v645_v24  ;;  %675 = vadd.xlane.f32.xlu2 %v1388_v7 }
 0x16b   : > { %v740_v25 = vpack.c.bf16 %v1392_v13, %v1392_v13  ;;  %v964_v59 = vunpack.c.l.b16 %v755_v1 }
 0x16d   : > { %v552_v45 = vpop.xlane.xlu2 %551  ;;  %v520_v55 = vpop.xlane.xlu0 %519  ;;  %v820_v50 = vunpack.c.l.b16 %v740_v25 }
 0x16e   : > { %v597_v52 = vsub.f32 %v1869_v51, %v552_v45  ;;  %v581_v54 = vsub.f32 %v1867_v49, %v520_v55 }
 0x16f   : > { %v522_v0 = vpop.xlane.xlu1 %521  ;;  %v835_v16 = vpack.c.b16 %v820_v50, %v819_v57 }
 0x170   : > { %v1394_v47 = vpop.eup %1393  ;;  %v647_v60 = vmul.f32 1.442695, %v597_v52  ;;  %v615_v2 = vmul.f32 1.442695, %v581_v54  ;;  %v582_v28 = vsub.f32 %v1871_v53, %v522_v0 }
 0x171   : > { %907 = vmatmul.bf16.vlgmr.msra.gmra.mxu1 %v835_v16  ;;  %677 = vadd.xlane.f32.xlu0 %v1392_v13  ;;  %v756_v5 = vpack.c.bf16 %v1394_v47, %v1394_v47 }
 0x172   : > { %1395 = vpow2.f32 %v647_v60  ;;  %v617_v58 = vmul.f32 1.442695, %v582_v28  ;;  %709 = vadd.xlane.f32.xlu1 %v1394_v47 }
 0x173   : > { %1397 = vpow2.f32 %v615_v2  ;;  %v965_v10 = vunpack.c.l.b16 %v756_v5 }
 0x174   : > { %1399 = vpow2.f32 %v617_v58 }
 0x175   : > { %v554_v51 = vpop.xlane.xlu2 %553  ;;  %v980_v49 = vpack.c.b16 %v965_v10, %v964_v59 }
 0x176   : > { %v598_v11 = vsub.f32 %v1876_v56, %v554_v51 }
 0x177   : > { %1052 = vmatmul.bf16.vlgmr.msra.gmra.mxu2 %v980_v49  ;;  %v524_v31 = vpop.xlane.xlu1 %523 }
 0x178   : > { %v1396_v18 = vpop.eup %1395  ;;  %v649_v30 = vmul.f32 1.442695, %v598_v11  ;;  %v583_v63 = vsub.f32 %v1878_v61, %v524_v31 }
 0x179   : > { %v1398_v62 = vpop.eup %1397  ;;  %711 = vadd.xlane.f32.xlu2 %v1396_v18  ;;  %v757_v43 = vpack.c.bf16 %v1396_v18, %v1396_v18 }
 0x17a   : > { %v1400_v53 = vpop.eup %1399  ;;  %1401 = vpow2.f32 %v649_v30  ;;  %679 = vadd.xlane.f32.xlu1 %v1398_v62  ;;  %v741_v19 = vpack.c.bf16 %v1398_v62, %v1398_v62  ;;  %v619_v7 = vmul.f32 1.442695, %v583_v63 }
 0x17b   : > { %v742_v22 = vpack.c.bf16 %v1400_v53, %v1400_v53  ;;  %v966_v13 = vunpack.c.l.b16 %v757_v43 }
 0x17c   : > { %v821_v40 = vunpack.c.l.b16 %v741_v19 }
 0x17d   : > { %v556_v23 = vpop.xlane.xlu2 %555  ;;  %v822_v41 = vunpack.c.l.b16 %v742_v22 }
 0x17e   : > { %v599_v6 = vsub.f32 %v1882_v3, %v556_v23 }
 0x17f   : > { %v836_v56 = vpack.c.b16 %v822_v41, %v821_v40 }
 0x180   : > { %v1402_v12 = vpop.eup %1401  ;;  %v651_v24 = vmul.f32 1.442695, %v599_v6 }
 0x181   : > { %912 = vmatmul.bf16.gmra.mxu1 %v836_v56  ;;  %681 = vadd.xlane.f32.xlu2 %v1400_v53  ;;  %v758_v48 = vpack.c.bf16 %v1402_v12, %v1402_v12 }
 0x182   : > { %1403 = vpow2.f32 %v651_v24  ;;  %713 = vadd.xlane.f32.xlu0 %v1402_v12 }
 0x183   : > { %1405 = vpow2.f32 %v619_v7  ;;  %v967_v25 = vunpack.c.l.b16 %v758_v48 }
 0x185   : > { %v558_v61 = vpop.xlane.xlu0 %557  ;;  %v526_v45 = vpop.xlane.xlu2 %525  ;;  %v981_v55 = vpack.c.b16 %v967_v25, %v966_v13 }
 0x186   : > { %v600_v57 = vsub.f32 %v1887_v15, %v558_v61  ;;  %v584_v3 = vsub.f32 %v1885_v14, %v526_v45 }
 0x187   : > { %1057 = vmatmul.bf16.gmra.mxu2 %v981_v55 }
 0x188   : > { %v1404_v50 = vpop.eup %1403  ;;  %v653_v52 = vmul.f32 1.442695, %v600_v57  ;;  %v621_v54 = vmul.f32 1.442695, %v584_v3 }
 0x189   : > { %v1406_v0 = vpop.eup %1405  ;;  %715 = vadd.xlane.f32.xlu1 %v1404_v50  ;;  %v759_v2 = vpack.c.bf16 %v1404_v50, %v1404_v50 }
 0x18a   : > { %1407 = vpow2.f32 %v653_v52  ;;  %683 = vadd.xlane.f32.xlu0 %v1406_v0  ;;  %v743_v14 = vpack.c.bf16 %v1406_v0, %v1406_v0 }
 0x18b   : > { %1409 = vpow2.f32 %v621_v54  ;;  %v968_v51 = vunpack.c.l.b16 %v759_v2 }
 0x18c   : > { %v823_v11 = vunpack.c.l.b16 %v743_v14 }
 0x18d   : > { %v560_v16 = vpop.xlane.xlu0 %559  ;;  %v528_v1 = vpop.xlane.xlu2 %527 }
 0x18e   : > { %v601_v47 = vsub.f32 %v1893_v27, %v560_v16  ;;  %v585_v60 = vsub.f32 %v1891_v21, %v528_v1 }
 0x190   : > { %v1408_v28 = vpop.eup %1407  ;;  %v655_v15 = vmul.f32 1.442695, %v601_v47  ;;  %v623_v5 = vmul.f32 1.442695, %v585_v60 }
 0x191   : > { %v1410_v58 = vpop.eup %1409  ;;  %717 = vadd.xlane.f32.xlu2 %v1408_v28  ;;  %v760_v59 = vpack.c.bf16 %v1408_v28, %v1408_v28 }
 0x192   : > { %1411 = vpow2.f32 %v655_v15  ;;  %685 = vadd.xlane.f32.xlu1 %v1410_v58  ;;  %v744_v10 = vpack.c.bf16 %v1410_v58, %v1410_v58 }
 0x193   : > { %1413 = vpow2.f32 %v623_v5  ;;  %v969_v49 = vunpack.c.l.b16 %v760_v59 }
 0x194   : > { %v824_v18 = vunpack.c.l.b16 %v744_v10 }
 0x195   : > { %v562_v30 = vpop.xlane.xlu1 %561  ;;  %v530_v27 = vpop.xlane.xlu0 %529  ;;  %v982_v31 = vpack.c.b16 %v969_v49, %v968_v51 }
 0x196   : > { %v602_v21 = vsub.f32 %v1899_v39, %v562_v30  ;;  %v586_v62 = vsub.f32 %v1897_v38, %v530_v27  ;;  %v837_v53 = vpack.c.b16 %v824_v18, %v823_v11 }
 0x197   : > { %1062 = vmatmul.bf16.gmra.mxu2 %v982_v31 }
 0x198   : > { %v1412_v19 = vpop.eup %1411  ;;  %v657_v63 = vmul.f32 1.442695, %v602_v21  ;;  %v625_v22 = vmul.f32 1.442695, %v586_v62  ;;  %917 = vmatmul.bf16.gmra.mxu1 %v837_v53 }
 0x199   : > { %v1414_v23 = vpop.eup %1413  ;;  %719 = vadd.xlane.f32.xlu0 %v1412_v19  ;;  %v761_v39 = vpack.c.bf16 %v1412_v19, %v1412_v19 }
 0x19a   : > { %1415 = vpow2.f32 %v657_v63  ;;  %687 = vadd.xlane.f32.xlu2 %v1414_v23  ;;  %v745_v12 = vpack.c.bf16 %v1414_v23, %v1414_v23 }
 0x19b   : > { %1417 = vpow2.f32 %v625_v22  ;;  %v970_v25 = vunpack.c.l.b16 %v761_v39 }
 0x19c   : > { %v825_v45 = vunpack.c.l.b16 %v745_v12 }
 0x19d   : > { %v564_v40 = vpop.xlane.xlu1 %563  ;;  %v532_v41 = vpop.xlane.xlu0 %531 }
 0x19e   : > { %v603_v6 = vsub.f32 %v1905_v46, %v564_v40  ;;  %v587_v7 = vsub.f32 %v1903_v42, %v532_v41 }
 0x1a0   : > { %v1416_v56 = vpop.eup %1415  ;;  %v659_v38 = vmul.f32 1.442695, %v603_v6  ;;  %v627_v43 = vmul.f32 1.442695, %v587_v7 }
 0x1a1   : > { %v1418_v24 = vpop.eup %1417  ;;  %721 = vadd.xlane.f32.xlu1 %v1416_v56  ;;  %v762_v48 = vpack.c.bf16 %v1416_v56, %v1416_v56 }
 0x1a2   : > { %1419 = vpow2.f32 %v659_v38  ;;  %689 = vadd.xlane.f32.xlu0 %v1418_v24  ;;  %v746_v13 = vpack.c.bf16 %v1418_v24, %v1418_v24 }
 0x1a3   : > { %1421 = vpow2.f32 %v627_v43  ;;  %v971_v61 = vunpack.c.l.b16 %v762_v48 }
 0x1a4   : > { %v826_v55 = vunpack.c.l.b16 %v746_v13 }
 0x1a5   : > { %v566_v57 = vpop.xlane.xlu2 %565  ;;  %v534_v46 = vpop.xlane.xlu1 %533  ;;  %v983_v3 = vpack.c.b16 %v971_v61, %v970_v25 }
 0x1a6   : > { %v604_v42 = vsub.f32 %v1919_v26, %v566_v57  ;;  %v588_v50 = vsub.f32 %v1917_v20, %v534_v46  ;;  %v838_v52 = vpack.c.b16 %v826_v55, %v825_v45 }
 0x1a7   : > { %1067 = vmatmul.bf16.gmra.mxu2 %v983_v3 }
 0x1a8   : > { %v1420_v54 = vpop.eup %1419  ;;  %v661_v0 = vmul.f32 1.442695, %v604_v42  ;;  %v629_v16 = vmul.f32 1.442695, %v588_v50  ;;  %922 = vmatmul.bf16.gmra.mxu1 %v838_v52 }
 0x1a9   : > { %v1422_v1 = vpop.eup %1421  ;;  %723 = vadd.xlane.f32.xlu2 %v1420_v54  ;;  %v763_v26 = vpack.c.bf16 %v1420_v54, %v1420_v54 }
 0x1aa   : > { %1423 = vpow2.f32 %v661_v0  ;;  %691 = vadd.xlane.f32.xlu1 %v1422_v1  ;;  %v747_v14 = vpack.c.bf16 %v1422_v1, %v1422_v1 }
 0x1ab   : > { %1425 = vpow2.f32 %v629_v16  ;;  %v972_v51 = vunpack.c.l.b16 %v763_v26 }
 0x1ac   : > { %v827_v11 = vunpack.c.l.b16 %v747_v14 }
 0x1ad   : > { %v568_v47 = vpop.xlane.xlu2 %567  ;;  %v536_v60 = vpop.xlane.xlu1 %535 }
 0x1ae   : > { %v605_v2 = vsub.f32 %v1945_v32, %v568_v47  ;;  %v589_v28 = vsub.f32 %v1939_v34, %v536_v60 }
 0x1b0   : > { %v1424_v15 = vpop.eup %1423  ;;  %v663_v20 = vmul.f32 1.442695, %v605_v2  ;;  %v631_v5 = vmul.f32 1.442695, %v589_v28 }
 0x1b1   : > { %v1426_v58 = vpop.eup %1425  ;;  %725 = vadd.xlane.f32.xlu0 %v1424_v15  ;;  %v764_v59 = vpack.c.bf16 %v1424_v15, %v1424_v15 }
 0x1b2   : > { %1427 = vpow2.f32 %v663_v20  ;;  %693 = vadd.xlane.f32.xlu2 %v1426_v58  ;;  %v748_v10 = vpack.c.bf16 %v1426_v58, %v1426_v58 }
 0x1b3   : > { %1429 = vpow2.f32 %v631_v5  ;;  %v973_v49 = vunpack.c.l.b16 %v764_v59 }
 0x1b4   : > { %v828_v18 = vunpack.c.l.b16 %v748_v10 }
 0x1b5   : > { %v570_v30 = vpop.xlane.xlu0 %569  ;;  %v538_v32 = vpop.xlane.xlu2 %537  ;;  %v984_v27 = vpack.c.b16 %v973_v49, %v972_v51 }
 0x1b6   : > { %v606_v34 = vsub.f32 %v1967_v8, %v570_v30  ;;  %v590_v31 = vsub.f32 %v1965_v17, %v538_v32  ;;  %v839_v21 = vpack.c.b16 %v828_v18, %v827_v11 }
 0x1b7   : > { %1072 = vmatmul.bf16.gmra.mxu2 %v984_v27 }
 0x1b8   : > { %v1428_v62 = vpop.eup %1427  ;;  %v665_v53 = vmul.f32 1.442695, %v606_v34  ;;  %v633_v19 = vmul.f32 1.442695, %v590_v31  ;;  %927 = vmatmul.bf16.gmra.mxu1 %v839_v21 }
 0x1b9   : > { %v1430_v63 = vpop.eup %1429  ;;  %727 = vadd.xlane.f32.xlu1 %v1428_v62  ;;  %v765_v8 = vpack.c.bf16 %v1428_v62, %v1428_v62 }
 0x1ba   : > { %1431 = vpow2.f32 %v665_v53  ;;  %695 = vadd.xlane.f32.xlu0 %v1430_v63  ;;  %v749_v39 = vpack.c.bf16 %v1430_v63, %v1430_v63 }
 0x1bb   : > { %1433 = vpow2.f32 %v633_v19  ;;  %v974_v12 = vunpack.c.l.b16 %v765_v8 }
 0x1bc   : > { %v829_v48 = vunpack.c.l.b16 %v749_v39 }
 0x1bd   : > { %v572_v22 = vpop.xlane.xlu0 %571  ;;  %v540_v23 = vpop.xlane.xlu2 %539 }
 0x1be   : > { %v607_v40 = vsub.f32 %v1985_v44, %v572_v22  ;;  %v591_v41 = vsub.f32 %v1979_v36, %v540_v23 }
 0x1c0   : > { %v1432_v6 = vpop.eup %1431  ;;  %v667_v17 = vmul.f32 1.442695, %v607_v40  ;;  %v635_v7 = vmul.f32 1.442695, %v591_v41 }
 0x1c1   : > { %v1434_v56 = vpop.eup %1433  ;;  %729 = vadd.xlane.f32.xlu2 %v1432_v6  ;;  %v766_v38 = vpack.c.bf16 %v1432_v6, %v1432_v6 }
 0x1c2   : > { %1435 = vpow2.f32 %v667_v17  ;;  %697 = vadd.xlane.f32.xlu1 %v1434_v56  ;;  %v750_v43 = vpack.c.bf16 %v1434_v56, %v1434_v56 }
 0x1c3   : > { %1437 = vpow2.f32 %v635_v7  ;;  %v975_v24 = vunpack.c.l.b16 %v766_v38 }
 0x1c4   : > { %v830_v13 = vunpack.c.l.b16 %v750_v43 }
 0x1c5   : > { %v574_v25 = vpop.xlane.xlu1 %573  ;;  %v542_v44 = vpop.xlane.xlu0 %541  ;;  %v985_v61 = vpack.c.b16 %v975_v24, %v974_v12 }
 0x1c6   : > { %v608_v36 = vsub.f32 %v1999_v35, %v574_v25  ;;  %v592_v45 = vsub.f32 %v1997_v4, %v542_v44  ;;  %v840_v55 = vpack.c.b16 %v830_v13, %v829_v48 }
 0x1c7   : > { %1077 = vmatmul.bf16.gmra.mxu2 %v985_v61 }
 0x1c8   : > { %v1436_v57 = vpop.eup %1435  ;;  %v669_v46 = vmul.f32 1.442695, %v608_v36  ;;  %v637_v3 = vmul.f32 1.442695, %v592_v45  ;;  %932 = vmatmul.bf16.gmra.mxu1 %v840_v55 }
 0x1c9   : > { %v1438_v42 = vpop.eup %1437  ;;  %731 = vadd.xlane.f32.xlu0 %v1436_v57  ;;  %v767_v35 = vpack.c.bf16 %v1436_v57, %v1436_v57 }
 0x1ca   : > { %1439 = vpow2.f32 %v669_v46  ;;  %699 = vadd.xlane.f32.xlu2 %v1438_v42  ;;  %v751_v1 = vpack.c.bf16 %v1438_v42, %v1438_v42 }
 0x1cb   : > { %1441 = vpow2.f32 %v637_v3  ;;  %v976_v26 = vunpack.c.l.b16 %v767_v35 }
 0x1cc   : > { %v831_v20 = vunpack.c.l.b16 %v751_v1 }
 0x1cd   : > { %v576_v50 = vpop.xlane.xlu1 %575  ;;  %v544_v52 = vpop.xlane.xlu0 %543 }
 0x1ce   : > { %v609_v54 = vsub.f32 %v2005_v9, %v576_v50  ;;  %v593_v0 = vsub.f32 %v2003_v29, %v544_v52 }
 0x1d0   : > { %v1440_v16 = vpop.eup %1439  ;;  %v639_v4 = vmul.f32 1.442695, %v593_v0  ;;  %v671_v2 = vmul.f32 1.442695, %v609_v54 }
 0x1d1   : > { %v1442_v47 = vpop.eup %1441  ;;  %v768_v60 = vpack.c.bf16 %v1440_v16, %v1440_v16 }
 0x1d2   : > { %701 = vadd.xlane.f32.xlu0 %v1442_v47  ;;  %v752_v28 = vpack.c.bf16 %v1442_v47, %v1442_v47  ;;  %1443 = vpow2.f32 %v639_v4 }
 0x1d3   : > { %v977_v15 = vunpack.c.l.b16 %v768_v60  ;;  %1445 = vpow2.f32 %v671_v2 }
 0x1d4   : > { %v832_v5 = vunpack.c.l.b16 %v752_v28 }
 0x1d5   : > { %v578_v14 = vpop.xlane.xlu2 %577  ;;  %v546_v58 = vpop.xlane.xlu1 %545  ;;  %v986_v59 = vpack.c.b16 %v977_v15, %v976_v26 }
 0x1d6   : > { %v610_v29 = vsub.f32 %v2013_v37, %v578_v14  ;;  %v594_v9 = vsub.f32 %v2011_v33, %v546_v58  ;;  %v841_v10 = vpack.c.b16 %v832_v5, %v831_v20 }
 0x1d7   : > { %1082 = vmatmul.bf16.gmra.mxu2 %v986_v59 }
 0x1d8   : > { %v673_v51 = vmul.f32 1.442695, %v610_v29  ;;  %v641_v49 = vmul.f32 1.442695, %v594_v9  ;;  %937 = vmatmul.bf16.gmra.mxu1 %v841_v10  ;;  %v1444_v11 = vpop.eup %1443 }
 0x1d9   : > { %703 = vadd.xlane.f32.xlu1 %v1444_v11  ;;  %v1446_v18 = vpop.eup %1445  ;;  %v753_v27 = vpack.c.bf16 %v1444_v11, %v1444_v11 }
 0x1da   : > { %1447 = vpow2.f32 %v673_v51  ;;  %v769_v30 = vpack.c.bf16 %v1446_v18, %v1446_v18 }
 0x1db   : > { %1449 = vpow2.f32 %v641_v49  ;;  %v833_v53 = vunpack.c.l.b16 %v753_v27 }
 0x1dc   : > { %v708_v33 = vpop.xlane.xlu0 %707  ;;  %v978_v21 = vunpack.c.l.b16 %v769_v30 }
 0x1dd   : > { %v676_v63 = vpop.xlane.xlu2 %675 }
 0x1de   : > { %1451 = vrcp.f32 %v676_v63 }
 0x1e0   : > { %v1448_v32 = vpop.eup %1447 }
 0x1e1   : > { %v1450_v34 = vpop.eup %1449  ;;  %737 = vadd.xlane.f32.xlu0 %v1448_v32  ;;  %v770_v31 = vpack.c.bf16 %v1448_v32, %v1448_v32  ;;  %733 = vadd.xlane.f32.xlu1 %v1440_v16 }
 0x1e2   : > { %705 = vadd.xlane.f32.xlu2 %v1450_v34  ;;  %v754_v37 = vpack.c.bf16 %v1450_v34, %v1450_v34 }
 0x1e3   : > { %v979_v62 = vunpack.c.l.b16 %v770_v31 }
 0x1e4   : > { %v834_v19 = vunpack.c.l.b16 %v754_v37  ;;  %v678_v41 = vpop.xlane.xlu0 %677  ;;  %v1452_v8 = vpop.eup %1451 }
 0x1e5   : > { %v987_v22 = vpack.c.b16 %v979_v62, %v978_v21  ;;  %v710_v40 = vpop.xlane.xlu1 %709  ;;  %1453 = vrcp.f32 %v678_v41 }
 0x1e6   : > { %v842_v23 = vpack.c.b16 %v834_v19, %v833_v53  ;;  %1455 = vrcp.f32 %v708_v33 }
 0x1e7   : > { %1087 = vmatmul.bf16.gmra.mxu2 %v987_v22 }
 0x1e8   : > { %942 = vmatmul.bf16.gmra.mxu1 %v842_v23 }
 0x1ea   : > { %735 = vadd.xlane.f32.xlu2 %v1446_v18 }
 0x1eb   : > { %v1454_v56 = vpop.eup %1453 }
 0x1ec   : > { %v712_v7 = vpop.xlane.xlu2 %711  ;;  %v1456_v12 = vpop.eup %1455 }
 0x1ed   : > { %v680_v39 = vpop.xlane.xlu1 %679 }
 0x1ee   : > { %v908_v6 = vpop.f32.mrf.mxu1  ;;  %1457 = vrcp.f32 %v680_v39 }
 0x1ef   : > { %v1125_v17 = vmul.f32 %v1452_v8, %v908_v6  ;;  %1459 = vrcp.f32 %v710_v40 }
 0x1f1   : > { %1157 = vst [vmem:[%s2048_s8] sm:$0xff] %v1125_v17 }
 0x1f4   : > { %v682_v13 = vpop.xlane.xlu2 %681  ;;  %v1458_v25 = vpop.eup %1457 }
 0x1f5   : > { %1461 = vrcp.f32 %v682_v13  ;;  %v1460_v36 = vpop.eup %1459  ;;  %v714_v45 = vpop.xlane.xlu0 %713 }
 0x1f6   : > { %v910_v38 = vpop.f32.mrf.mxu1  ;;  %1463 = vrcp.f32 %v712_v7 }
 0x1f7   : > { %v1126_v43 = vmul.f32 %v1454_v56, %v910_v38  ;;  %1465 = vrcp.f32 %v714_v45 }
 0x1f9   : > { %1158 = vst [vmem:[%s2048_s8 + $0x8] sm:$0xff] %v1126_v43 }
 0x1fa   : > { %v1053_v24 = vpop.f32.mrf.mxu2 }
 0x1fb   : > { %v1141_v48 = vmul.f32 %v1456_v12, %v1053_v24  ;;  %v1462_v46 = vpop.eup %1461 }
 0x1fc   : > { %v1464_v50 = vpop.eup %1463  ;;  %v716_v52 = vpop.xlane.xlu1 %715 }
 0x1fd   : > { %1173 = vst [vmem:[%s2048_s8 + $0x80] sm:$0xff] %v1141_v48  ;;  %v684_v35 = vpop.xlane.xlu0 %683  ;;  %v1466_v16 = vpop.eup %1465 }
 0x1fe   : > { %v913_v44 = vpop.f32.mrf.mxu1  ;;  %1467 = vrcp.f32 %v684_v35 }
 0x1ff   : > { %v1127_v61 = vmul.f32 %v1458_v25, %v913_v44  ;;  %1469 = vrcp.f32 %v716_v52 }
 0x201   : > { %1159 = vst [vmem:[%s2048_s8 + $0x10] sm:$0xff] %v1127_v61 }
 0x202   : > { %v1055_v55 = vpop.f32.mrf.mxu2 }
 0x203   : > { %v1142_v57 = vmul.f32 %v1460_v36, %v1055_v55 }
 0x204   : > { %v718_v4 = vpop.xlane.xlu2 %717  ;;  %v1468_v2 = vpop.eup %1467 }
 0x205   : > { %1174 = vst [vmem:[%s2048_s8 + $0x88] sm:$0xff] %v1142_v57  ;;  %v686_v60 = vpop.xlane.xlu1 %685  ;;  %v1470_v15 = vpop.eup %1469 }
 0x206   : > { %v915_v3 = vpop.f32.mrf.mxu1  ;;  %1471 = vrcp.f32 %v686_v60 }
 0x207   : > { %v1128_v42 = vmul.f32 %v1462_v46, %v915_v3  ;;  %1473 = vrcp.f32 %v718_v4 }
 0x209   : > { %1160 = vst [vmem:[%s2048_s8 + $0x18] sm:$0xff] %v1128_v42 }
 0x20a   : > { %v1058_v54 = vpop.f32.mrf.mxu2 }
 0x20b   : > { %v1143_v0 = vmul.f32 %v1464_v50, %v1058_v54 }
 0x20c   : > { %v720_v20 = vpop.xlane.xlu0 %719  ;;  %v1472_v59 = vpop.eup %1471 }
 0x20d   : > { %1175 = vst [vmem:[%s2048_s8 + $0x90] sm:$0xff] %v1143_v0  ;;  %v688_v58 = vpop.xlane.xlu2 %687  ;;  %v1474_v10 = vpop.eup %1473 }
 0x20e   : > { %1475 = vrcp.f32 %v688_v58 }
 0x20f   : > { %1477 = vrcp.f32 %v720_v20 }
 0x212   : > { %v1060_v1 = vpop.f32.mrf.mxu2 }
 0x213   : > { %v1144_v47 = vmul.f32 %v1466_v16, %v1060_v1 }
 0x214   : > { %v722_v51 = vpop.xlane.xlu1 %721  ;;  %v1476_v30 = vpop.eup %1475 }
 0x215   : > { %1176 = vst [vmem:[%s2048_s8 + $0x98] sm:$0xff] %v1144_v47  ;;  %v918_v28 = vpop.f32.mrf.mxu1  ;;  %v690_v18 = vpop.xlane.xlu0 %689 }
 0x216   : > { %v1129_v26 = vmul.f32 %v1468_v2, %v918_v28  ;;  %1479 = vrcp.f32 %v690_v18  ;;  %v1478_v34 = vpop.eup %1477 }
 0x217   : > { %1481 = vrcp.f32 %v722_v51 }
 0x218   : > { %1161 = vst [vmem:[%s2048_s8 + $0x20] sm:$0xff] %v1129_v26 }
 0x21a   : > { %v1063_v5 = vpop.f32.mrf.mxu2 }
 0x21b   : > { %v1145_v14 = vmul.f32 %v1470_v15, %v1063_v5 }
 0x21c   : > { %v724_v31 = vpop.xlane.xlu2 %723  ;;  %v1480_v62 = vpop.eup %1479 }
 0x21d   : > { %1177 = vst [vmem:[%s2048_s8 + $0xa0] sm:$0xff] %v1145_v14  ;;  %v920_v29 = vpop.f32.mrf.mxu1  ;;  %v692_v21 = vpop.xlane.xlu1 %691 }
 0x21e   : > { %v1130_v9 = vmul.f32 %v1472_v59, %v920_v29  ;;  %1483 = vrcp.f32 %v692_v21  ;;  %v1482_v63 = vpop.eup %1481 }
 0x21f   : > { %1485 = vrcp.f32 %v724_v31 }
 0x220   : > { %1162 = vst [vmem:[%s2048_s8 + $0x28] sm:$0xff] %v1130_v9 }
 0x222   : > { %v1065_v49 = vpop.f32.mrf.mxu2 }
 0x223   : > { %v1146_v11 = vmul.f32 %v1474_v10, %v1065_v49 }
 0x224   : > { %v726_v22 = vpop.xlane.xlu0 %725  ;;  %v1484_v8 = vpop.eup %1483 }
 0x225   : > { %1178 = vst [vmem:[%s2048_s8 + $0xa8] sm:$0xff] %v1146_v11  ;;  %v923_v32 = vpop.f32.mrf.mxu1  ;;  %v694_v41 = vpop.xlane.xlu2 %693 }
 0x226   : > { %v1131_v27 = vmul.f32 %v1476_v30, %v923_v32  ;;  %1487 = vrcp.f32 %v694_v41  ;;  %v1486_v7 = vpop.eup %1485 }
 0x227   : > { %1489 = vrcp.f32 %v726_v22 }
 0x228   : > { %1163 = vst [vmem:[%s2048_s8 + $0x30] sm:$0xff] %v1131_v27 }
 0x22a   : > { %v1068_v37 = vpop.f32.mrf.mxu2 }
 0x22b   : > { %v1147_v33 = vmul.f32 %v1478_v34, %v1068_v37 }
 0x22c   : > { %v728_v39 = vpop.xlane.xlu1 %727  ;;  %v1488_v12 = vpop.eup %1487 }
 0x22d   : > { %1179 = vst [vmem:[%s2048_s8 + $0xb0] sm:$0xff] %v1147_v33  ;;  %v925_v53 = vpop.f32.mrf.mxu1  ;;  %v696_v43 = vpop.xlane.xlu0 %695 }
 0x22e   : > { %v1132_v19 = vmul.f32 %v1480_v62, %v925_v53  ;;  %1491 = vrcp.f32 %v696_v43  ;;  %v1490_v13 = vpop.eup %1489 }
 0x22f   : > { %1493 = vrcp.f32 %v728_v39 }
 0x230   : > { %1164 = vst [vmem:[%s2048_s8 + $0x38] sm:$0xff] %v1132_v19 }
 0x232   : > { %v1070_v23 = vpop.f32.mrf.mxu2 }
 0x233   : > { %v1148_v40 = vmul.f32 %v1482_v63, %v1070_v23 }
 0x234   : > { %v730_v25 = vpop.xlane.xlu2 %729  ;;  %v1492_v45 = vpop.eup %1491 }
 0x235   : > { %1180 = vst [vmem:[%s2048_s8 + $0xb8] sm:$0xff] %v1148_v40  ;;  %v928_v6 = vpop.f32.mrf.mxu1  ;;  %v698_v36 = vpop.xlane.xlu1 %697 }
 0x236   : > { %v1133_v17 = vmul.f32 %v1484_v8, %v928_v6  ;;  %1495 = vrcp.f32 %v698_v36  ;;  %v1494_v46 = vpop.eup %1493 }
 0x237   : > { %1497 = vrcp.f32 %v730_v25 }
 0x238   : > { %1165 = vst [vmem:[%s2048_s8 + $0x40] sm:$0xff] %v1133_v17 }
 0x23a   : > { %v1073_v56 = vpop.f32.mrf.mxu2 }
 0x23b   : > { %v1149_v38 = vmul.f32 %v1486_v7, %v1073_v56 }
 0x23c   : > { %v732_v3 = vpop.xlane.xlu0 %731  ;;  %v1496_v54 = vpop.eup %1495 }
 0x23d   : > { %1181 = vst [vmem:[%s2048_s8 + $0xc0] sm:$0xff] %v1149_v38  ;;  %v930_v24 = vpop.f32.mrf.mxu1  ;;  %v700_v52 = vpop.xlane.xlu2 %699 }
 0x23e   : > { %v1134_v48 = vmul.f32 %v1488_v12, %v930_v24  ;;  %1499 = vrcp.f32 %v700_v52  ;;  %v1498_v4 = vpop.eup %1497 }
 0x23f   : > { %1501 = vrcp.f32 %v732_v3 }
 0x240   : > { %1166 = vst [vmem:[%s2048_s8 + $0x48] sm:$0xff] %v1134_v48 }
 0x242   : > { %v1075_v44 = vpop.f32.mrf.mxu2 }
 0x243   : > { %v1150_v61 = vmul.f32 %v1490_v13, %v1075_v44 }
 0x244   : > { %v1500_v2 = vpop.eup %1499 }
 0x245   : > { %1182 = vst [vmem:[%s2048_s8 + $0xc8] sm:$0xff] %v1150_v61  ;;  %v933_v55 = vpop.f32.mrf.mxu1  ;;  %v702_v60 = vpop.xlane.xlu0 %701 }
 0x246   : > { %v1135_v57 = vmul.f32 %v1492_v45, %v933_v55  ;;  %1503 = vrcp.f32 %v702_v60  ;;  %v1502_v5 = vpop.eup %1501 }
 0x248   : > { %1167 = vst [vmem:[%s2048_s8 + $0x50] sm:$0xff] %v1135_v57 }
 0x24a   : > { %v1078_v42 = vpop.f32.mrf.mxu2 }
 0x24b   : > { %v1151_v50 = vmul.f32 %v1494_v46, %v1078_v42 }
 0x24c   : > { %v704_v16 = vpop.xlane.xlu1 %703  ;;  %v1504_v59 = vpop.eup %1503 }
 0x24d   : > { %1183 = vst [vmem:[%s2048_s8 + $0xd0] sm:$0xff] %v1151_v50  ;;  %v935_v0 = vpop.f32.mrf.mxu1 }
 0x24e   : > { %v1136_v35 = vmul.f32 %v1496_v54, %v935_v0 }
 0x250   : > { %1168 = vst [vmem:[%s2048_s8 + $0x58] sm:$0xff] %v1136_v35 }
 0x252   : > { %v1080_v1 = vpop.f32.mrf.mxu2 }
 0x253   : > { %v1152_v47 = vmul.f32 %v1498_v4, %v1080_v1 }
 0x254   : > { %v734_v20 = vpop.xlane.xlu1 %733  ;;  %v738_v27 = vpop.xlane.xlu0 %737 }
 0x255   : > { %1184 = vst [vmem:[%s2048_s8 + $0xd8] sm:$0xff] %v1152_v47  ;;  %v938_v28 = vpop.f32.mrf.mxu1  ;;  %v706_v15 = vpop.xlane.xlu2 %705  ;;  %1505 = vrcp.f32 %v734_v20 }
 0x256   : > { %v1137_v26 = vmul.f32 %v1500_v2, %v938_v28  ;;  %1507 = vrcp.f32 %v704_v16 }
 0x258   : > { %1169 = vst [vmem:[%s2048_s8 + $0x60] sm:$0xff] %v1137_v26 }
 0x25a   : > { %v1083_v14 = vpop.f32.mrf.mxu2 }
 0x25b   : > { %v1153_v58 = vmul.f32 %v1502_v5, %v1083_v14  ;;  %v1506_v51 = vpop.eup %1505 }
 0x25c   : > { %v1508_v18 = vpop.eup %1507 }
 0x25d   : > { %1185 = vst [vmem:[%s2048_s8 + $0xe0] sm:$0xff] %v1153_v58  ;;  %v940_v29 = vpop.f32.mrf.mxu1  ;;  %v736_v10 = vpop.xlane.xlu2 %735 }
 0x25e   : > { %v1138_v9 = vmul.f32 %v1504_v59, %v940_v29  ;;  %1509 = vrcp.f32 %v736_v10 }
 0x25f   : > { %1511 = vrcp.f32 %v706_v15 }
 0x260   : > { %1170 = vst [vmem:[%s2048_s8 + $0x68] sm:$0xff] %v1138_v9  ;;  %1513 = vrcp.f32 %v738_v27 }
 0x262   : > { %v1085_v49 = vpop.f32.mrf.mxu2 }
 0x263   : > { %v1154_v11 = vmul.f32 %v1506_v51, %v1085_v49 }
 0x264   : > { %v1510_v34 = vpop.eup %1509 }
 0x265   : > { %1186 = vst [vmem:[%s2048_s8 + $0xe8] sm:$0xff] %v1154_v11  ;;  %v943_v30 = vpop.f32.mrf.mxu1  ;;  %v1512_v33 = vpop.eup %1511 }
 0x266   : > { %v1139_v32 = vmul.f32 %v1508_v18, %v943_v30  ;;  %v1514_v53 = vpop.eup %1513 }
 0x268   : > { %1171 = vst [vmem:[%s2048_s8 + $0x70] sm:$0xff] %v1139_v32 }
 0x26a   : > { %v1088_v31 = vpop.f32.mrf.mxu2 }
 0x26b   : > { %v1155_v37 = vmul.f32 %v1510_v34, %v1088_v31 }
 0x26d   : > { %1187 = vst [vmem:[%s2048_s8 + $0xf0] sm:$0xff] %v1155_v37  ;;  %v945_v21 = vpop.f32.mrf.mxu1 }
 0x26e   : > { %v1140_v62 = vmul.f32 %v1512_v33, %v945_v21 }
 0x270   : > { %1172 = vst [vmem:[%s2048_s8 + $0x78] sm:$0xff] %v1140_v62 }
 0x272   : > { %v1090_v19 = vpop.f32.mrf.mxu2 }
 0x273   : > { %v1156_v63 = vmul.f32 %v1514_v53, %v1090_v19 }
 0x275   : > { %1188 = vst [vmem:[%s2048_s8 + $0xf8] sm:$0xff] %v1156_v63 }
 0x276   : > { %s1326_s16 = sshll.u32 %s1594_s13, 7  ;;  %s1212_s17 = sshll.u32 %s2048_s8, 4  ;;  %s1213_s17 = int_to_ptr.vmem [resolvable:$true] %s1212_s17 }
 0x277   : > { %s1201_s23 = scalar_lea.hbm %s2122_s2, %s1326_s16  ;;  %s1551_s25 = smov 2048  }
 0x278   : > { %s1214_s24 = sshll.u32 %s1201_s23, 4  ;;  %1335 = sst [smem:[#allocation6]] (%p1612_p6), %s1551_s25  ;;  %s1215_s24 = int_to_ptr.hbm [resolvable:$true] %s1214_s24 }
 0x279   : > { %s1552_s26 = smov 8192   ;;  %s1553_s27 = smov 16  }
 0x27a   : > { %1336 = sst [smem:[#allocation6 + $0x1]] (%p1612_p6), %s1552_s26  ;;  %s1554_s13 = smov 128  }
 0x27b   : > { %1337 = sst [smem:[#allocation6 + $0x2]] (%p1612_p6), %s1553_s27  ;;  %s1555_s28 = smov 8  }
 0x27c   : > { %1338 = sst [smem:[#allocation6 + $0x3]] (%p1612_p6), %s1554_s13  ;;  %s1556_s29 = smov [#allocation5]  }
 0x27d   : > { %1339 = sst [smem:[#allocation6 + $0x4]] (%p1612_p6), %s1554_s13  ;;  %s1557_s30 = smov 0  }
 0x27e   : > { %1340 = sst [smem:[#allocation6 + $0x5]] (%p1612_p6), %s1555_s28 }
 0x27f   : > { %1341 = dma.general (%p1612_p6), %s1213_s17, 4096, %s1215_s24, %s1190_s14, %s1556_s29, [#allocation6], %s1557_s30, 0  }
 0x280 PF: > { %p1347_p0 = scmp.ge.s32.totalorder %s1549_s12, 2  ;;  %s1242_s3 = sand.u32 1, %s1537_s9  }
 0x281   : > { %s1243_s4 = scalar_lea.sflag [#allocation4], %s1242_s3 }
 0x282   : > { %p1344_p1 = pnand %p1347_p0, %p1616_p8 }
 0x284   : > { %p1345_p2 = pneg %p1344_p1 }
 0x286   : > { %1532 = dma.done.wait (%p1345_p2), %s1243_s4, 4096  }
 0x287   : > { %1534 = vsyncadd (%p1345_p2), %s1243_s4, 4294963200  ;;  %p12_p3 = scmp.ge.s32.totalorder %s1598_s15, 6   ;;  %s2125_s9 = smov %s1541_s10 }
 0x288   : > { %s2126_s10 = smov %s1545_s11  ;;  %s2127_s11 = smov %s1610_s18 }
 0x289   : > { %s2128_s12 = smov %s1598_s15  ;;  %14 = sbr.rel (!%p12_p3) target bundleno = 3 (0x3), region = 114 }
 0x28e   :  { %1249 = vsyncpa [#allocation4], 1 }
 0x28f   :  { %1251 = vsyncpa [#allocation4 + $0x1], 1 }

</bundles_post_ra>
